<compile_context>
chip_gen: v7x
topology: tpu7x:2x2x1
jax: 0.10.0
libtpu: 0.0.40
codegen_flags: <defaults>
</compile_context>

<pallas_src>
import functools

import jax
import jax.numpy as jnp
from jax import lax
from jax.experimental import pallas as pl
from jax.experimental.pallas import tpu as pltpu

# ----------------------------- small synthetic config -----------------------------
B = 2                     # image batch
T = 2                     # number of text descriptions
IMG = 32                  # raw image spatial size (stand-in for SAM's 1024)
SAM_PATCH = 4             # SAM patch-embed patch size -> 8x8 feature map
HS = IMG // SAM_PATCH     # 8
WS = IMG // SAM_PATCH     # 8
S_SAM = HS * WS           # 64 SAM feature-map locations
C_SAM = 256               # SAM embedding channels (fixed by nn.Linear(256, 3))
HT, WT = 32, 32           # bilinear upscale target (stand-in for 224x224)
C_PIX = 3                 # SAM_to_CLIP output channels == CLIP pixel channels
SAM_PD = 3 * SAM_PATCH * SAM_PATCH          # 48
VIT_PATCH = 8             # CLIP vision patch size (stand-in for 32)
NP = (HT // VIT_PATCH) * (WT // VIT_PATCH)  # 16 CLIP patches
VPP = VIT_PATCH * VIT_PATCH                 # 64 pixels per CLIP patch
VIT_PD = C_PIX * VPP                        # 192
DV = 64                   # CLIP vision hidden (stand-in for 768)
DT = 64                   # CLIP text hidden   (stand-in for 512)
DP = 32                   # CLIP projection dim (stand-in for 512)
VOCAB = 64
L = 8                     # text sequence length
DIFF_K = SAM_PD * S_SAM   # 3072 : contraction dim of the folded vision operator

assert DV == DT, "parameter slab packing assumes DV == DT"


# ----------------------------- the single fused Pallas kernel ----------------------
def ftclip_fused_kernel(scale_ref,   # SMEM (1,1) f32 : exp(logit_scale)
                        diff_ref,    # (B, DIFF_K)    bf16 : pre-post SAM-patch diff
                        m_ref,       # (DIFF_K, DV)   bf16 : folded vision operator
                        slab_ref,    # (16, DT)       f32  : biases / LN / pos_emb
                        proj_ref,    # (2*DV, DP)     f32  : [w_vproj ; w_tproj]
                        tok_ref,     # (T, L, DT)     f32  : token embeddings
                        mask_ref,    # (T, L)         f32  : attention mask
                        logits_ref): # (B, T)         f32  : logits_per_image
    eps = 1e-5

    def layernorm(x, g, b):
        mu = jnp.mean(x, axis=-1, keepdims=True)
        var = jnp.mean((x - mu) ** 2, axis=-1, keepdims=True)
        return (x - mu) * lax.rsqrt(var + eps) * g + b

    # ---- vision tower: the full SAM->S2C->upscale->CLIP-patch->pool linear chain is
    #      one folded operator, so the whole image batch is a single MXU matmul
    #      (bf16 operands, f32 accumulation).
    pooled_v = slab_ref[0:1, :] + jnp.dot(
        diff_ref[...], m_ref[...], preferred_element_type=jnp.float32)   # (B, DV)
    pooled_v = layernorm(pooled_v, slab_ref[1:2, :], slab_ref[2:3, :])
    img = jnp.dot(pooled_v, proj_ref[0:DV, :],
                  preferred_element_type=jnp.float32)                    # (B, DP)
    img = img * lax.rsqrt(jnp.sum(img * img, axis=-1, keepdims=True) + 1e-12)

    # ---- text tower (batched over the T descriptions) ----
    mask = mask_ref[...]                                                  # (T, L)
    tok = tok_ref[...] + slab_ref[8:16, :][None, :, :]                    # + pos_emb
    denom = jnp.maximum(jnp.sum(mask, axis=-1, keepdims=True), 1.0)       # (T, 1)
    pooled_t = jnp.sum(tok * mask[:, :, None], axis=1) / denom            # (T, DT)
    pooled_t = layernorm(pooled_t, slab_ref[3:4, :], slab_ref[4:5, :])
    txt = jnp.dot(pooled_t, proj_ref[DV:2 * DV, :],
                  preferred_element_type=jnp.float32)                     # (T, DP)
    txt = txt * lax.rsqrt(jnp.sum(txt * txt, axis=-1, keepdims=True) + 1e-12)

    # ---- logits_per_image = exp(logit_scale) * img . txt^T ; one full-tile store ----
    logits = scale_ref[0, 0] * lax.dot_general(
        img, txt, (((1,), (1,)), ((), ())), preferred_element_type=jnp.float32)
    logits_ref[...] = logits


def ftclip_logits(diff_flat, tok_emb, attn_mask, folded):
    vmem = functools.partial(pl.BlockSpec, memory_space=pltpu.MemorySpace.VMEM)
    smem = pl.BlockSpec(memory_space=pltpu.MemorySpace.SMEM)
    # Gridless single invocation: total working set << 1 MiB, fits VMEM on every
    # generation including v7x's 64 MiB.
    # TODO(synk): at real FTCLIP shapes (1024x1024 images, ViT-H/B towers) reintroduce
    # a grid over batch/spatial tiles with dimension_semantics=("parallel", ...) and a
    # vmem_limit_bytes budget (<= ~32 MiB per step on v7x), and size matmul tiles as
    # multiples of 256 on v6e/v7x (128 on v5e).
    return pl.pallas_call(
        ftclip_fused_kernel,
        out_shape=jax.ShapeDtypeStruct((B, T), jnp.float32),
        in_specs=[smem, vmem(), vmem(), vmem(), vmem(), vmem(), vmem()],
        out_specs=vmem(),
    )(folded["scale"], diff_flat, folded["m_op"], folded["slab"],
      folded["proj_slab"], tok_emb, attn_mask)


# ----------------------------- wrapper glue (layout / param folding) ---------------
def bilinear_matrix(out_size, in_size):
    """1-D bilinear interpolation matrix, align_corners=False (PyTorch semantics)."""
    scale = in_size / out_size
    i = jnp.arange(out_size, dtype=jnp.float32)
    src = jnp.clip((i + 0.5) * scale - 0.5, 0.0, in_size - 1)
    lo = jnp.floor(src)
    frac = src - lo
    lo = lo.astype(jnp.int32)
    hi = jnp.minimum(lo + 1, in_size - 1)
    m = jnp.zeros((out_size, in_size), jnp.float32)
    rows = jnp.arange(out_size)
    m = m.at[rows, lo].add(1.0 - frac)
    m = m.at[rows, hi].add(frac)
    return m


def extract_patches_nchw(x, p):
    b, c, h, w = x.shape
    x = x.reshape(b, c, h // p, p, w // p, p)
    x = x.transpose(0, 2, 4, 1, 3, 5)                 # (B, H/p, W/p, C, p, p)
    return x.reshape(b, h // p, w // p, c * p * p)


def sam_patches_channel_major(x_nchw):
    """(B, 3, IMG, IMG) -> (B, SAM_PD, S_SAM): patch-dim then spatial (row-major hs,ws)."""
    pt = extract_patches_nchw(x_nchw, SAM_PATCH)       # (B, HS, WS, SAM_PD)
    return pt.reshape(x_nchw.shape[0], S_SAM, SAM_PD).transpose(0, 2, 1)


def init_params(key):
    ks = jax.random.split(key, 9)
    n = lambda k, shape, s: (jax.random.normal(k, shape, jnp.float32) * s)
    return {
        # SAM encoder stand-in
        "w_sam": n(ks[0], (SAM_PD, C_SAM), 0.02),
        "b_sam": n(ks[8], (1, C_SAM), 0.02),   # cancels exactly in the pre/post diff
        # the module's own SAM_to_CLIP = nn.Linear(256, 3)
        "w_s2c": n(ks[1], (C_SAM, C_PIX), 1.0 / (C_SAM ** 0.5)),
        "b_s2c": n(ks[7], (1, C_PIX), 0.02),
        # CLIP vision stand-in (patch-embed rows ordered (c, py, px))
        "w_patch": n(ks[2], (VIT_PD, DV), 0.02),
        "b_patch": jnp.zeros((1, DV), jnp.float32),
        "v_gamma": jnp.ones((1, DV), jnp.float32),
        "v_beta": jnp.zeros((1, DV), jnp.float32),
        "w_vproj": n(ks[3], (DV, DP), 0.02),
        # CLIP text stand-in
        "tok_table": n(ks[4], (VOCAB, DT), 0.02),
        "pos_emb": n(ks[5], (L, DT), 0.01),
        "t_gamma": jnp.ones((1, DT), jnp.float32),
        "t_beta": jnp.zeros((1, DT), jnp.float32),
        "w_tproj": n(ks[6], (DT, DP), 0.02),
        "logit_scale": jnp.full((1, 1), jnp.log(1.0 / 0.07), jnp.float32),
    }


def fold_operators(p):
    """One-time parameter algebra.  Every stage before LayerNorm is linear, so the
    SAM patch-embed, SAM_to_CLIP Linear(256,3), bilinear upscale (align_corners=False),
    CLIP patch-embed and CLIP patch mean-pool collapse into one (DIFF_K, DV) operator
    applied directly to the pre/post difference."""
    # (1) SAM patch-embed folded with SAM_to_CLIP: (48, 256) @ (256, 3) -> (48, 3);
    #     the 256-channel dimension never exists at runtime.
    w_comb = p["w_sam"] @ p["w_s2c"]                                    # (SAM_PD, 3)
    # (2) bilinear 8x8 -> 32x32 upscale fused with the mean over the 16 CLIP patches.
    rhw = jnp.kron(bilinear_matrix(HT, HS), bilinear_matrix(WT, WS))    # (1024, S_SAM)
    r_pool = rhw.reshape(HT // VIT_PATCH, VIT_PATCH, WT // VIT_PATCH, VIT_PATCH, S_SAM)
    r_pool = r_pool.mean(axis=(0, 2)).reshape(VPP, S_SAM)               # (VPP, S_SAM)
    # (3) CLIP vision patch-embed, rows ordered (c, py, px).
    w_patch_cm = p["w_patch"].reshape(C_PIX, VPP, DV)                   # (3, VPP, DV)
    # (4) Q[c, s, :] = sum_p r_pool[p, s] * w_patch[c, p, :]
    q = jnp.einsum("ps,cpv->csv", r_pool, w_patch_cm)                   # (3, S_SAM, DV)
    # (5) M[(d, s), :] = sum_c w_comb[d, c] * Q[c, s, :]
    m_op = jnp.einsum("dc,csv->dsv", w_comb, q).reshape(DIFF_K, DV)     # (3072, DV)
    # (6) SAM_to_CLIP bias passes unchanged through the patch mean -> fold into b_patch.
    b_patch_eff = p["b_patch"][0] + jnp.einsum("c,cpv->v", p["b_s2c"][0], w_patch_cm)
    # (7) Pack the small f32 parameters into one (16, DT) slab:
    #     row 0 b_patch_eff, 1 v_gamma, 2 v_beta, 3 t_gamma, 4 t_beta, rows 8..15 pos_emb.
    slab = jnp.zeros((16, DT), jnp.float32)
    slab = slab.at[0].set(b_patch_eff)
    slab = slab.at[1].set(p["v_gamma"][0])
    slab = slab.at[2].set(p["v_beta"][0])
    slab = slab.at[3].set(p["t_gamma"][0])
    slab = slab.at[4].set(p["t_beta"][0])
    slab = slab.at[8:16].set(p["pos_emb"])
    # (8) Both projection heads stacked along sublanes (rows 0..63 vision, 64..127 text).
    proj_slab = jnp.concatenate([p["w_vproj"], p["w_tproj"]], axis=0)   # (2*DV, DP)
    return {
        "m_op": m_op.astype(jnp.bfloat16),
        "slab": slab,
        "proj_slab": proj_slab,
        "scale": jnp.exp(p["logit_scale"]),      # exp folded out of the kernel -> SMEM
    }


def ftclip_forward(params, folded, pre_image, post_image, input_ids, attention_mask):
    # Layout glue only: all reshapes/transposes stay in the wrapper.
    pre = jnp.squeeze(pre_image, axis=1)                 # (B, 3, IMG, IMG)
    post = jnp.squeeze(post_image, axis=1)
    # SAM patch-embed bias b_sam cancels exactly in the pre/post difference, so the
    # folded vision operator only ever sees the difference image (f32 subtract, ONE
    # bf16 cast, one input DMA instead of two).
    diff = sam_patches_channel_major(pre) - sam_patches_channel_major(post)
    diff_flat = diff.reshape(pre.shape[0], DIFF_K).astype(jnp.bfloat16)  # (B, 3072)
    # text embedding lookup is glue; pooling/LN/projection/logits live in the kernel
    tok_emb = jnp.take(params["tok_table"], input_ids, axis=0)           # (T, L, DT)
    return ftclip_logits(diff_flat, tok_emb,
                         attention_mask.astype(jnp.float32), folded)


def reference_logits(params, folded, pre_image, post_image, input_ids, attention_mask):
    """Pure-JAX mirror of the kernel math (same folded / bf16 operands) for a tolerance check."""
    eps = 1e-5

    def ln(x, g, b):
        mu = jnp.mean(x, -1, keepdims=True)
        var = jnp.mean((x - mu) ** 2, -1, keepdims=True)
        return (x - mu) * lax.rsqrt(var + eps) * g + b

    pre = jnp.squeeze(pre_image, 1)
    post = jnp.squeeze(post_image, 1)
    diff = sam_patches_channel_major(pre) - sam_patches_channel_major(post)
    diff = diff.reshape(pre.shape[0], DIFF_K).astype(jnp.bfloat16).astype(jnp.float32)
    slab, proj = folded["slab"], folded["proj_slab"]
    pooled_v = slab[0:1] + diff @ folded["m_op"].astype(jnp.float32)
    pooled_v = ln(pooled_v, slab[1:2], slab[2:3])
    img = pooled_v @ proj[:DV]
    img = img * lax.rsqrt(jnp.sum(img * img, -1, keepdims=True) + 1e-12)
    mask = attention_mask.astype(jnp.float32)
    tok = jnp.take(params["tok_table"], input_ids, axis=0) + slab[8:16][None]
    denom = jnp.maximum(jnp.sum(mask, -1, keepdims=True), 1.0)
    pooled_t = jnp.sum(tok * mask[:, :, None], axis=1) / denom
    pooled_t = ln(pooled_t, slab[3:4], slab[4:5])
    txt = pooled_t @ proj[DV:]
    txt = txt * lax.rsqrt(jnp.sum(txt * txt, -1, keepdims=True) + 1e-12)
    return folded["scale"][0, 0] * (img @ txt.T)


# ----------------------------- main -------------------------------------------------
if __name__ == "__main__":
    key = jax.random.PRNGKey(0)
    k_pre, k_post, k_ids, k_param = jax.random.split(key, 4)

    pre_image = jax.random.normal(k_pre, (B, 1, 3, IMG, IMG), jnp.float32)
    post_image = jax.random.normal(k_post, (B, 1, 3, IMG, IMG), jnp.float32)
    input_ids = jax.random.randint(k_ids, (T, L), 0, VOCAB, dtype=jnp.int32)
    attention_mask = jnp.array([[1] * L, [1] * (L - 3) + [0] * 3], jnp.float32)

    params = init_params(k_param)
    folded = fold_operators(params)

    fwd = jax.jit(ftclip_forward)
    logits = fwd(params, folded, pre_image, post_image, input_ids, attention_mask)
    jax.block_until_ready(logits)
    assert logits.shape == (B, T) and logits.dtype == jnp.float32
    assert bool(jnp.all(jnp.isfinite(logits)))

    ref = reference_logits(params, folded, pre_image, post_image,
                           input_ids, attention_mask)
    assert bool(jnp.allclose(logits, ref, rtol=2e-2, atol=2e-2))
    print("KERNEL_OK")
</pallas_src>

<mosaic_0001>
module attributes {stable_mosaic.version = 11 : i64} {
  func.func @ftclip_fused_kernel(%arg0: memref<1x1xf32, #tpu.memory_space<smem>>, %arg1: memref<2x3072xbf16, #tpu.memory_space<vmem>>, %arg2: memref<3072x64xbf16, #tpu.memory_space<vmem>>, %arg3: memref<16x64xf32, #tpu.memory_space<vmem>>, %arg4: memref<128x32xf32, #tpu.memory_space<vmem>>, %arg5: memref<2x8x64xf32, #tpu.memory_space<vmem>>, %arg6: memref<2x8xf32, #tpu.memory_space<vmem>>, %arg7: memref<2x2xf32, #tpu.memory_space<vmem>>) attributes {dimension_semantics = [], scalar_prefetch = 0 : i64, scratch_operands = 0 : i64, tpu.core_type = #tpu.core_type<tc>} {
    %c0 = arith.constant 0 : index
    %c0_0 = arith.constant 0 : index
    %0 = vector.load %arg3[%c0, %c0_0] : memref<16x64xf32, #tpu.memory_space<vmem>>, vector<1x64xf32>
    %c0_1 = arith.constant 0 : index
    %c0_2 = arith.constant 0 : index
    %1 = vector.load %arg1[%c0_1, %c0_2] : memref<2x3072xbf16, #tpu.memory_space<vmem>>, vector<2x3072xbf16>
    %c0_3 = arith.constant 0 : index
    %c0_4 = arith.constant 0 : index
    %2 = vector.load %arg2[%c0_3, %c0_4] : memref<3072x64xbf16, #tpu.memory_space<vmem>>, vector<3072x64xbf16>
    %cst = arith.constant dense<0.000000e+00> : vector<2x64xf32>
    %3 = tpu.matmul %1, %2, %cst {dimension_numbers = #tpu.dot_dimension_numbers<[1], [0], [0], [1], [0, 0, 1, 1], [], []>} : vector<2x3072xbf16>, vector<3072x64xbf16>, vector<2x64xf32> -> vector<2x64xf32>
    %4 = vector.broadcast %0 : vector<1x64xf32> to vector<2x64xf32>
    %5 = arith.addf %4, %3 : vector<2x64xf32>
    %c1 = arith.constant 1 : index
    %c0_5 = arith.constant 0 : index
    %6 = vector.load %arg3[%c1, %c0_5] : memref<16x64xf32, #tpu.memory_space<vmem>>, vector<1x64xf32>
    %c2 = arith.constant 2 : index
    %c0_6 = arith.constant 0 : index
    %7 = vector.load %arg3[%c2, %c0_6] : memref<16x64xf32, #tpu.memory_space<vmem>>, vector<1x64xf32>
    %cst_7 = arith.constant dense<0.000000e+00> : vector<2xf32>
    %8 = vector.multi_reduction <add>, %5, %cst_7 [1] : vector<2x64xf32> to vector<2xf32>
    %9 = vector.shape_cast %8 : vector<2xf32> to vector<2x1xf32>
    %cst_8 = arith.constant 6.400000e+01 : f32
    %10 = vector.broadcast %cst_8 : f32 to vector<2x1xf32>
    %11 = arith.divf %9, %10 : vector<2x1xf32>
    %12 = vector.broadcast %11 : vector<2x1xf32> to vector<2x64xf32>
    %13 = arith.subf %5, %12 : vector<2x64xf32>
    %14 = arith.mulf %13, %13 : vector<2x64xf32>
    %cst_9 = arith.constant dense<0.000000e+00> : vector<2xf32>
    %15 = vector.multi_reduction <add>, %14, %cst_9 [1] : vector<2x64xf32> to vector<2xf32>
    %16 = vector.shape_cast %15 : vector<2xf32> to vector<2x1xf32>
    %cst_10 = arith.constant 6.400000e+01 : f32
    %17 = vector.broadcast %cst_10 : f32 to vector<2x1xf32>
    %18 = arith.divf %16, %17 : vector<2x1xf32>
    %19 = vector.broadcast %11 : vector<2x1xf32> to vector<2x64xf32>
    %20 = arith.subf %5, %19 : vector<2x64xf32>
    %cst_11 = arith.constant 9.99999974E-6 : f32
    %21 = vector.broadcast %cst_11 : f32 to vector<2x1xf32>
    %22 = arith.addf %18, %21 : vector<2x1xf32>
    %23 = math.rsqrt %22 : vector<2x1xf32>
    %24 = vector.broadcast %23 : vector<2x1xf32> to vector<2x64xf32>
    %25 = arith.mulf %20, %24 : vector<2x64xf32>
    %26 = vector.broadcast %6 : vector<1x64xf32> to vector<2x64xf32>
    %27 = arith.mulf %25, %26 : vector<2x64xf32>
    %28 = vector.broadcast %7 : vector<1x64xf32> to vector<2x64xf32>
    %29 = arith.addf %27, %28 : vector<2x64xf32>
    %c0_12 = arith.constant 0 : index
    %c0_13 = arith.constant 0 : index
    %30 = vector.load %arg4[%c0_12, %c0_13] : memref<128x32xf32, #tpu.memory_space<vmem>>, vector<64x32xf32>
    %cst_14 = arith.constant dense<0.000000e+00> : vector<2x32xf32>
    %31 = tpu.matmul %29, %30, %cst_14 {dimension_numbers = #tpu.dot_dimension_numbers<[1], [0], [0], [1], [0, 0, 1, 1], [], []>} : vector<2x64xf32>, vector<64x32xf32>, vector<2x32xf32> -> vector<2x32xf32>
    %32 = arith.mulf %31, %31 : vector<2x32xf32>
    %cst_15 = arith.constant dense<0.000000e+00> : vector<2xf32>
    %33 = vector.multi_reduction <add>, %32, %cst_15 [1] : vector<2x32xf32> to vector<2xf32>
    %34 = vector.shape_cast %33 : vector<2xf32> to vector<2x1xf32>
    %cst_16 = arith.constant 9.99999996E-13 : f32
    %35 = vector.broadcast %cst_16 : f32 to vector<2x1xf32>
    %36 = arith.addf %34, %35 : vector<2x1xf32>
    %37 = math.rsqrt %36 : vector<2x1xf32>
    %38 = vector.broadcast %37 : vector<2x1xf32> to vector<2x32xf32>
    %39 = arith.mulf %31, %38 : vector<2x32xf32>
    %c0_17 = arith.constant 0 : index
    %c0_18 = arith.constant 0 : index
    %40 = vector.load %arg6[%c0_17, %c0_18] : memref<2x8xf32, #tpu.memory_space<vmem>>, vector<2x8xf32>
    %c0_19 = arith.constant 0 : index
    %c0_20 = arith.constant 0 : index
    %c0_21 = arith.constant 0 : index
    %41 = vector.load %arg5[%c0_19, %c0_20, %c0_21] : memref<2x8x64xf32, #tpu.memory_space<vmem>>, vector<2x8x64xf32>
    %c8 = arith.constant 8 : index
    %c0_22 = arith.constant 0 : index
    %42 = vector.load %arg3[%c8, %c0_22] : memref<16x64xf32, #tpu.memory_space<vmem>>, vector<8x64xf32>
    %43 = vector.shape_cast %42 : vector<8x64xf32> to vector<1x8x64xf32>
    %44 = vector.broadcast %43 : vector<1x8x64xf32> to vector<2x8x64xf32>
    %45 = arith.addf %41, %44 : vector<2x8x64xf32>
    %cst_23 = arith.constant dense<0.000000e+00> : vector<2xf32>
    %46 = vector.multi_reduction <add>, %40, %cst_23 [1] : vector<2x8xf32> to vector<2xf32>
    %47 = vector.shape_cast %46 : vector<2xf32> to vector<2x1xf32>
    %cst_24 = arith.constant 1.000000e+00 : f32
    %48 = vector.broadcast %cst_24 : f32 to vector<2x1xf32>
    %49 = arith.maximumf %47, %48 : vector<2x1xf32>
    %50 = vector.shape_cast %40 : vector<2x8xf32> to vector<2x8x1xf32>
    %51 = vector.broadcast %50 : vector<2x8x1xf32> to vector<2x8x64xf32>
    %52 = arith.mulf %45, %51 : vector<2x8x64xf32>
    %cst_25 = arith.constant dense<0.000000e+00> : vector<2x64xf32>
    %53 = vector.multi_reduction <add>, %52, %cst_25 [1] : vector<2x8x64xf32> to vector<2x64xf32>
    %54 = vector.broadcast %49 : vector<2x1xf32> to vector<2x64xf32>
    %55 = arith.divf %53, %54 : vector<2x64xf32>
    %c3 = arith.constant 3 : index
    %c0_26 = arith.constant 0 : index
    %56 = vector.load %arg3[%c3, %c0_26] : memref<16x64xf32, #tpu.memory_space<vmem>>, vector<1x64xf32>
    %c4 = arith.constant 4 : index
    %c0_27 = arith.constant 0 : index
    %57 = vector.load %arg3[%c4, %c0_27] : memref<16x64xf32, #tpu.memory_space<vmem>>, vector<1x64xf32>
    %cst_28 = arith.constant dense<0.000000e+00> : vector<2xf32>
    %58 = vector.multi_reduction <add>, %55, %cst_28 [1] : vector<2x64xf32> to vector<2xf32>
    %59 = vector.shape_cast %58 : vector<2xf32> to vector<2x1xf32>
    %cst_29 = arith.constant 6.400000e+01 : f32
    %60 = vector.broadcast %cst_29 : f32 to vector<2x1xf32>
    %61 = arith.divf %59, %60 : vector<2x1xf32>
    %62 = vector.broadcast %61 : vector<2x1xf32> to vector<2x64xf32>
    %63 = arith.subf %55, %62 : vector<2x64xf32>
    %64 = arith.mulf %63, %63 : vector<2x64xf32>
    %cst_30 = arith.constant dense<0.000000e+00> : vector<2xf32>
    %65 = vector.multi_reduction <add>, %64, %cst_30 [1] : vector<2x64xf32> to vector<2xf32>
    %66 = vector.shape_cast %65 : vector<2xf32> to vector<2x1xf32>
    %cst_31 = arith.constant 6.400000e+01 : f32
    %67 = vector.broadcast %cst_31 : f32 to vector<2x1xf32>
    %68 = arith.divf %66, %67 : vector<2x1xf32>
    %69 = vector.broadcast %61 : vector<2x1xf32> to vector<2x64xf32>
    %70 = arith.subf %55, %69 : vector<2x64xf32>
    %cst_32 = arith.constant 9.99999974E-6 : f32
    %71 = vector.broadcast %cst_32 : f32 to vector<2x1xf32>
    %72 = arith.addf %68, %71 : vector<2x1xf32>
    %73 = math.rsqrt %72 : vector<2x1xf32>
    %74 = vector.broadcast %73 : vector<2x1xf32> to vector<2x64xf32>
    %75 = arith.mulf %70, %74 : vector<2x64xf32>
    %76 = vector.broadcast %56 : vector<1x64xf32> to vector<2x64xf32>
    %77 = arith.mulf %75, %76 : vector<2x64xf32>
    %78 = vector.broadcast %57 : vector<1x64xf32> to vector<2x64xf32>
    %79 = arith.addf %77, %78 : vector<2x64xf32>
    %c64 = arith.constant 64 : index
    %c0_33 = arith.constant 0 : index
    %80 = vector.load %arg4[%c64, %c0_33] : memref<128x32xf32, #tpu.memory_space<vmem>>, vector<64x32xf32>
    %cst_34 = arith.constant dense<0.000000e+00> : vector<2x32xf32>
    %81 = tpu.matmul %79, %80, %cst_34 {dimension_numbers = #tpu.dot_dimension_numbers<[1], [0], [0], [1], [0, 0, 1, 1], [], []>} : vector<2x64xf32>, vector<64x32xf32>, vector<2x32xf32> -> vector<2x32xf32>
    %82 = arith.mulf %81, %81 : vector<2x32xf32>
    %cst_35 = arith.constant dense<0.000000e+00> : vector<2xf32>
    %83 = vector.multi_reduction <add>, %82, %cst_35 [1] : vector<2x32xf32> to vector<2xf32>
    %84 = vector.shape_cast %83 : vector<2xf32> to vector<2x1xf32>
    %cst_36 = arith.constant 9.99999996E-13 : f32
    %85 = vector.broadcast %cst_36 : f32 to vector<2x1xf32>
    %86 = arith.addf %84, %85 : vector<2x1xf32>
    %87 = math.rsqrt %86 : vector<2x1xf32>
    %88 = vector.broadcast %87 : vector<2x1xf32> to vector<2x32xf32>
    %89 = arith.mulf %81, %88 : vector<2x32xf32>
    %c0_37 = arith.constant 0 : index
    %c0_38 = arith.constant 0 : index
    %90 = memref.load %arg0[%c0_37, %c0_38] : memref<1x1xf32, #tpu.memory_space<smem>>
    %cst_39 = arith.constant dense<0.000000e+00> : vector<2x2xf32>
    %91 = tpu.matmul %39, %89, %cst_39 {dimension_numbers = #tpu.dot_dimension_numbers<[1], [1], [0], [0], [0, 0, 1, 0], [], []>} : vector<2x32xf32>, vector<2x32xf32>, vector<2x2xf32> -> vector<2x2xf32>
    %92 = vector.broadcast %90 : f32 to vector<2x2xf32>
    %93 = arith.mulf %92, %91 : vector<2x2xf32>
    %c0_40 = arith.constant 0 : index
    %c0_41 = arith.constant 0 : index
    %94 = vector.load %arg7[%c0_40, %c0_41] : memref<2x2xf32, #tpu.memory_space<vmem>>, vector<2x2xf32>
    tpu.vector_store %arg7[%c0_40, %c0_41], %93 {strides = array<i32>} : memref<2x2xf32, #tpu.memory_space<vmem>>, vector<2x2xf32>,
    return
  }
}

</mosaic_0001>

<bundles_post_ra>
// kernel: ftclip_forward.1
= control target key start
LH: loop header
LB: loop body
LE: loop exit
PB: predicated region body
PF: predicated region fallthrough
CT: control target
= control target key end

     0   :  { %vm2351_vm0 = vcmask 58368   ;;  %v424_v2 = vlaneseq  ;;  %v3418_v41 = vmov 1966171168   ;;  %vm2263_vm1 = vcmask 523264   ;;  %s4224_s0 = inlined_call_operand.<no memory space> [shape: f32[1,1], index: 0, kind: input, shape index: {}]   ;;  %s4225_s1 = inlined_call_operand.vmem [shape: bf16[2,3072], index: 1, kind: input, shape index: {}]   ;;  %s4226_s2 = inlined_call_operand.vmem [shape: bf16[3072,64], index: 2, kind: input, shape index: {}]   ;;  %s4227_s3 = inlined_call_operand.vmem [shape: f32[16,64], index: 3, kind: input, shape index: {}]   ;;  %s4228_s4 = inlined_call_operand.vmem [shape: f32[128,32], index: 4, kind: input, shape index: {}]   ;;  %s4229_s5 = inlined_call_operand.vmem [shape: f32[2,8,64], index: 5, kind: input, shape index: {}]   ;;  %s4230_s6 = inlined_call_operand.vmem [shape: f32[2,8], index: 6, kind: input, shape index: {}]   ;;  %s4231_s7 = inlined_call_operand.hbm [shape: f32[2,2], index: 7, kind: output, shape index: {}]  }
   0x1   :  { %v2345_v0 = vld [vmem:[%s4230_s6] sm:$0x3]  ;;  %v3191_v8 = vld [vmem:[%s4226_s2 + $0x48] sm:$0xff]   ;;  %v3195_v14 = vld [vmem:[%s4226_s2 + $0x50] sm:$0xff]   ;;  %v422_v42 = vunpack.c.l.s4 %v3418_v41  ;;  %vm2399_vm2 = vcmask 1041409   ;;  %vm2230_vm3 = vcmask 517120  }
   0x2   :  { %v3187_v1 = vld [vmem:[%s4226_s2 + $0x40] sm:$0xff]   ;;  %v2352_v3 = vsel %vm2351_vm0, %v2345_v0, 0.0  ;;  %v3478_v7 = vshrl.u32 %v424_v2, 7  ;;  %v3192_v9 = vld [vmem:[%s4226_s2 + $0xc8] sm:$0xff]   ;;  %v3196_v15 = vld [vmem:[%s4226_s2 + $0xd0] sm:$0xff]  }
   0x3   :  { %v3188_v4 = vld [vmem:[%s4226_s2 + $0xc0] sm:$0xff]   ;;  %2353 = vadd.xlane.f32.xlu0 %v2352_v3  ;;  %2831 = vmatprep.subr.bf16.mxu0 %v3187_v1  ;;  %v3193_v11 = vld [vmem:[%s4226_s2 + $0x8] sm:$0xff]   ;;  %v3197_v16 = vld [vmem:[%s4226_s2 + $0x10] sm:$0xff]   ;;  %v423_v45 = vunpack.c.0.s8 %v422_v42 }
   0x4   :  { %2853 = vmatprep.subr.bf16.mxu1 %v3188_v4  ;;  %v3189_v5 = vld [vmem:[%s4226_s2] sm:$0xff]   ;;  %v2358_v10 = vsub.s32 0, %v3478_v7  ;;  %v3194_v12 = vld [vmem:[%s4226_s2 + $0x88] sm:$0xff]   ;;  %v3198_v17 = vld [vmem:[%s4226_s2 + $0x90] sm:$0xff]   ;;  %v2365_v22 = vsub.s32 1, %v3478_v7 }
   0x5   :  { %v3190_v6 = vld [vmem:[%s4226_s2 + $0x80] sm:$0xff]   ;;  %2832 = vmatpush3.bf16.msra.mxu0 %v3189_v5  ;;  %v3199_v18 = vld [vmem:[%s4226_s2 + $0x58] sm:$0xff]   ;;  %v3207_v28 = vld [vmem:[%s4226_s2 + $0x68] sm:$0xff]   ;;  %v3576_v47 = vsub.s32 %v423_v45, %v3478_v7 }
   0x6   :  { %2854 = vmatpush3.bf16.msra.mxu1 %v3190_v6  ;;  %2833 = vmatprep.subr.bf16.mxu0 %v3191_v8  ;;  %v2359_v13 = vrot.slane %v2345_v0, %v2358_v10  ;;  %v3200_v19 = vld [vmem:[%s4226_s2 + $0xd8] sm:$0xff]   ;;  %v3203_v23 = vld [vmem:[%s4226_s2 + $0x60] sm:$0xff]   ;;  %v2366_v27 = vrot.slane %v2345_v0, %v2365_v22  ;;  %v3208_v29 = vld [vmem:[%s4226_s2 + $0xe8] sm:$0xff]  }
   0x7   :  { %2855 = vmatprep.subr.bf16.mxu1 %v3192_v9  ;;  %v3201_v20 = vld [vmem:[%s4226_s2 + $0x18] sm:$0xff]   ;;  %v3204_v24 = vld [vmem:[%s4226_s2 + $0xe0] sm:$0xff]   ;;  %v3209_v30 = vld [vmem:[%s4226_s2 + $0x28] sm:$0xff]  }
   0x8   :  { %2361 = vbcast.lane.b32.xlu1 %v2359_v13, 256  ;;  %v3202_v21 = vld [vmem:[%s4226_s2 + $0x98] sm:$0xff]   ;;  %v3205_v25 = vld [vmem:[%s4226_s2 + $0x20] sm:$0xff]   ;;  %v3210_v31 = vld [vmem:[%s4226_s2 + $0xa8] sm:$0xff]  }
   0x9   :  { %2834 = vmatpush3.bf16.msra.mxu0 %v3193_v11  ;;  %v3206_v26 = vld [vmem:[%s4226_s2 + $0xa0] sm:$0xff]   ;;  %v3211_v32 = vld [vmem:[%s4226_s2 + $0x70] sm:$0xff]   ;;  %v3215_v36 = vld [vmem:[%s4226_s2 + $0x78] sm:$0xff]  }
   0xa   :  { %2856 = vmatpush3.bf16.msra.mxu1 %v3194_v12  ;;  %2835 = vmatprep.subr.bf16.mxu0 %v3195_v14  ;;  %v3212_v33 = vld [vmem:[%s4226_s2 + $0xf0] sm:$0xff]   ;;  %v3216_v37 = vld [vmem:[%s4226_s2 + $0xf8] sm:$0xff]   ;;  %v30_v40 = vld [vmem:[%s4225_s1] sm:$0xff] }
   0xb   :  { %2857 = vmatprep.subr.bf16.mxu1 %v3196_v15  ;;  %v3213_v34 = vld [vmem:[%s4226_s2 + $0x30] sm:$0xff]   ;;  %v3217_v38 = vld [vmem:[%s4226_s2 + $0x38] sm:$0xff]   ;;  %v3220_v43 = vld [vmem:[%s4226_s2 + $0x140] sm:$0xff]   ;;  %v420_v46 = vcombine.high %v30_v40, %v30_v40  ;;  %v427_v48 = vrot.slane %v30_v40, %v3576_v47 }
   0xc   :  { %v3214_v35 = vld [vmem:[%s4226_s2 + $0xb0] sm:$0xff]   ;;  %v3218_v39 = vld [vmem:[%s4226_s2 + $0xb8] sm:$0xff]   ;;  %v3221_v44 = vld [vmem:[%s4226_s2 + $0x1c0] sm:$0xff]  }
   0xd   :  { %2836 = vmatpush3.bf16.msra.mxu0 %v3197_v16  ;;  %v3580_v49 = vrot.slane %v420_v46, %v3576_v47  ;;  %v435_v50 = vcombine.high %v427_v48, %v427_v48  ;;  %v443_v51 = vrot.slane %v427_v48, %v3576_v47  ;;  %v3222_v53 = vld [vmem:[%s4226_s2 + $0x100] sm:$0xff]   ;;  %v3224_v58 = vld [vmem:[%s4226_s2 + $0x148] sm:$0xff]   ;;  %v3228_v0 = vld [vmem:[%s4226_s2 + $0x150] sm:$0xff]  }
   0xe   :  { %2858 = vmatpush3.bf16.msra.mxu1 %v3198_v17  ;;  %2837 = vmatprep.subr.bf16.mxu0 %v3199_v18  ;;  %v3223_v55 = vld [vmem:[%s4226_s2 + $0x180] sm:$0xff]   ;;  %v3225_v60 = vld [vmem:[%s4226_s2 + $0x1c8] sm:$0xff]   ;;  %v3229_v1 = vld [vmem:[%s4226_s2 + $0x1d0] sm:$0xff]  }
   0xf   :  { %2859 = vmatprep.subr.bf16.mxu1 %v3200_v19  ;;  %v436_v52 = vcombine.high %v3580_v49, %v3580_v49  ;;  %v457_v54 = vrot.slane %v435_v50, %v3576_v47  ;;  %v465_v57 = vcombine.high %v443_v51, %v443_v51  ;;  %v3226_v61 = vld [vmem:[%s4226_s2 + $0x108] sm:$0xff]   ;;  %v3230_v2 = vld [vmem:[%s4226_s2 + $0x110] sm:$0xff]   ;;  %v3232_v4 = vld [vmem:[%s4226_s2 + $0x158] sm:$0xff]  }
  0x10   :  { %v3227_v63 = vld [vmem:[%s4226_s2 + $0x188] sm:$0xff]   ;;  %v3231_v3 = vld [vmem:[%s4226_s2 + $0x190] sm:$0xff]   ;;  %v3233_v5 = vld [vmem:[%s4226_s2 + $0x1d8] sm:$0xff]  }
  0x11   :  { %2838 = vmatpush3.bf16.msra.mxu0 %v3201_v20  ;;  %v464_v56 = vrot.slane %v436_v52, %v3576_v47  ;;  %1775 = vmatprep.mubr.bf16.mxu0 %v457_v54  ;;  %v467_v59 = vcombine.high %v457_v54, %v457_v54  ;;  %v3234_v6 = vld [vmem:[%s4226_s2 + $0x118] sm:$0xff]   ;;  %v3236_v8 = vld [vmem:[%s4226_s2 + $0x160] sm:$0xff]   ;;  %v3240_v12 = vld [vmem:[%s4226_s2 + $0x168] sm:$0xff]  }
  0x12   :  { %2860 = vmatpush3.bf16.msra.mxu1 %v3202_v21  ;;  %2839 = vmatprep.subr.bf16.mxu0 %v3203_v23  ;;  %v3235_v7 = vld [vmem:[%s4226_s2 + $0x198] sm:$0xff]   ;;  %v3237_v9 = vld [vmem:[%s4226_s2 + $0x1e0] sm:$0xff]   ;;  %v3241_v13 = vld [vmem:[%s4226_s2 + $0x1e8] sm:$0xff]  }
  0x13   :  { %2861 = vmatprep.subr.bf16.mxu1 %v3204_v24  ;;  %v468_v62 = vcombine.high %v464_v56, %v464_v56  ;;  %1815 = vmatprep.mubr.bf16.mxu1 %v467_v59  ;;  %v3238_v10 = vld [vmem:[%s4226_s2 + $0x120] sm:$0xff]   ;;  %v3242_v14 = vld [vmem:[%s4226_s2 + $0x128] sm:$0xff]   ;;  %v3244_v16 = vld [vmem:[%s4226_s2 + $0x170] sm:$0xff]   ;;  %v450_v24 = vrot.slane %v3580_v49, %v3576_v47 }
  0x14   :  { %v3239_v11 = vld [vmem:[%s4226_s2 + $0x1a0] sm:$0xff]   ;;  %v3243_v15 = vld [vmem:[%s4226_s2 + $0x1a8] sm:$0xff]   ;;  %v3245_v17 = vld [vmem:[%s4226_s2 + $0x1f0] sm:$0xff]  }
  0x15   :  { %2840 = vmatpush3.bf16.msra.mxu0 %v3205_v25  ;;  %v3246_v18 = vld [vmem:[%s4226_s2 + $0x130] sm:$0xff]   ;;  %v3248_v20 = vld [vmem:[%s4226_s2 + $0x178] sm:$0xff]   ;;  %v3252_v25 = vld [vmem:[%s4226_s2 + $0x240] sm:$0xff]  }
  0x16   :  { %2862 = vmatpush3.bf16.msra.mxu1 %v3206_v26  ;;  %2841 = vmatprep.subr.bf16.mxu0 %v3207_v28  ;;  %v3247_v19 = vld [vmem:[%s4226_s2 + $0x1b0] sm:$0xff]   ;;  %v3249_v21 = vld [vmem:[%s4226_s2 + $0x1f8] sm:$0xff]   ;;  %v3253_v26 = vld [vmem:[%s4226_s2 + $0x2c0] sm:$0xff]  }
  0x17   :  { %2863 = vmatprep.subr.bf16.mxu1 %v3208_v29  ;;  %v3250_v22 = vld [vmem:[%s4226_s2 + $0x138] sm:$0xff]   ;;  %v3255_v28 = vld [vmem:[%s4226_s2 + $0x280] sm:$0xff]   ;;  %v466_v29 = vcombine.high %v450_v24, %v450_v24  ;;  %v3272_v46 = vld [vmem:[%s4226_s2 + $0x268] sm:$0xff]  }
  0x18   :  { %v3251_v23 = vld [vmem:[%s4226_s2 + $0x1b8] sm:$0xff]   ;;  %v3268_v42 = vld [vmem:[%s4226_s2 + $0x260] sm:$0xff]   ;;  %v3273_v48 = vld [vmem:[%s4226_s2 + $0x2e8] sm:$0xff]  }
  0x19   :  { %2368 = vbcast.lane.b32.xlu0 %v2366_v27, 256  ;;  %2842 = vmatpush3.bf16.msra.mxu0 %v3209_v30  ;;  %v3254_v27 = vld [vmem:[%s4226_s2 + $0x200] sm:$0xff]   ;;  %v3256_v30 = vld [vmem:[%s4226_s2 + $0x248] sm:$0xff]   ;;  %v3266_v40 = vld [vmem:[%s4226_s2 + $0x218] sm:$0xff]  }
  0x1a   :  { %2864 = vmatpush3.bf16.msra.mxu1 %v3210_v31  ;;  %2843 = vmatprep.subr.bf16.mxu0 %v3211_v32  ;;  %v3257_v31 = vld [vmem:[%s4226_s2 + $0x2c8] sm:$0xff]   ;;  %v3267_v41 = vld [vmem:[%s4226_s2 + $0x298] sm:$0xff]   ;;  %v3271_v45 = vld [vmem:[%s4226_s2 + $0x2a0] sm:$0xff]  }
  0x1b   :  { %2865 = vmatprep.subr.bf16.mxu1 %v3212_v33  ;;  %v3258_v32 = vld [vmem:[%s4226_s2 + $0x208] sm:$0xff]  }
  0x1c   :  { %v3259_v33 = vld [vmem:[%s4226_s2 + $0x288] sm:$0xff]  }
  0x1d   :  { %2844 = vmatpush3.bf16.msra.mxu0 %v3213_v34  ;;  %v3260_v34 = vld [vmem:[%s4226_s2 + $0x250] sm:$0xff]   ;;  %v3274_v49 = vld [vmem:[%s4226_s2 + $0x228] sm:$0xff]  }
  0x1e   :  { %2866 = vmatpush3.bf16.msra.mxu1 %v3214_v35  ;;  %2845 = vmatprep.subr.bf16.mxu0 %v3215_v36  ;;  %v3261_v35 = vld [vmem:[%s4226_s2 + $0x2d0] sm:$0xff]   ;;  %v3275_v50 = vld [vmem:[%s4226_s2 + $0x2a8] sm:$0xff]  }
  0x1f   :  { %2867 = vmatprep.subr.bf16.mxu1 %v3216_v37  ;;  %v3262_v36 = vld [vmem:[%s4226_s2 + $0x210] sm:$0xff]   ;;  %v31_v52 = vld [vmem:[%s4225_s1 + $0x8] sm:$0xff] }
  0x20   :  { %v3263_v37 = vld [vmem:[%s4226_s2 + $0x290] sm:$0xff]   ;;  %v476_v54 = vrot.slane %v31_v52, %v3576_v47 }
  0x21   :  { %2846 = vmatpush3.bf16.msra.mxu0 %v3217_v38  ;;  %v3264_v38 = vld [vmem:[%s4226_s2 + $0x258] sm:$0xff]  }
  0x22   :  { %2868 = vmatpush3.bf16.msra.mxu1 %v3218_v39  ;;  %2875 = vmatprep.subr.bf16.mxu0 %v3220_v43  ;;  %v3265_v39 = vld [vmem:[%s4226_s2 + $0x2d8] sm:$0xff]   ;;  %v3269_v43 = vld [vmem:[%s4226_s2 + $0x2e0] sm:$0xff]  }
  0x23   :  { %2897 = vmatprep.subr.bf16.mxu1 %v3221_v44  ;;  %v3270_v44 = vld [vmem:[%s4226_s2 + $0x220] sm:$0xff]  }
  0x24   :  { %1776 = vmatmul.mubr.bf16.vlgmr.msra.gmra.mrb[0].mxu0 %v443_v51  ;;  %v3276_v51 = vld [vmem:[%s4226_s2 + $0x270] sm:$0xff]  }
  0x25   :  { %2876 = vmatpush3.bf16.msra.mxu0 %v3222_v53  ;;  %1816 = vmatmul.mubr.bf16.vlgmr.msra.gmra.mrb[0].mxu1 %v465_v57  ;;  %v3277_v53 = vld [vmem:[%s4226_s2 + $0x2f0] sm:$0xff]  }
  0x26   :  { %2877 = vmatprep.subr.bf16.mxu0 %v3224_v58  ;;  %2898 = vmatpush3.bf16.msra.mxu1 %v3223_v55  ;;  %v469_v55 = vcombine.high %v31_v52, %v31_v52  ;;  %v3279_v57 = vld [vmem:[%s4226_s2 + $0x2b0] sm:$0xff]   ;;  %v484_v58 = vcombine.high %v476_v54, %v476_v54 }
  0x27   :  { %1855 = vmatprep.mubr.bf16.mxu0 %v464_v56  ;;  %2899 = vmatprep.subr.bf16.mxu1 %v3225_v60  ;;  %v3278_v56 = vld [vmem:[%s4226_s2 + $0x230] sm:$0xff]   ;;  %v3280_v60 = vld [vmem:[%s4226_s2 + $0x278] sm:$0xff]  }
  0x28   :  { %1895 = vmatprep.mubr.bf16.mxu1 %v468_v62  ;;  %v3768_v59 = vrot.slane %v469_v55, %v3576_v47  ;;  %v506_v62 = vrot.slane %v484_v58, %v3576_v47  ;;  %v3326_v52 = vld [vmem:[%s4226_s2 + $0x4d0] sm:$0xff]   ;;  %v2348_v55 = vld [vmem:[%s4227_s3 + $0x8] sm:$0xff] }
  0x29   :  { %2878 = vmatpush3.bf16.msra.mxu0 %v3226_v61  ;;  %v3281_v61 = vld [vmem:[%s4226_s2 + $0x2f8] sm:$0xff]  }
  0x2a   :  { %2879 = vmatprep.subr.bf16.mxu0 %v3228_v0  ;;  %2900 = vmatpush3.bf16.msra.mxu1 %v3227_v63  ;;  %v485_v63 = vcombine.high %v3768_v59, %v3768_v59  ;;  %v3282_v0 = vld [vmem:[%s4226_s2 + $0x238] sm:$0xff]  }
  0x2b   :  { %2901 = vmatprep.subr.bf16.mxu1 %v3229_v1  ;;  %v3283_v1 = vld [vmem:[%s4226_s2 + $0x2b8] sm:$0xff]  }
  0x2d   :  { %2880 = vmatpush3.bf16.msra.mxu0 %v3230_v2  ;;  %v516_v2 = vcombine.high %v506_v62, %v506_v62 }
  0x2e   :  { %2881 = vmatprep.subr.bf16.mxu0 %v3232_v4  ;;  %2902 = vmatpush3.bf16.msra.mxu1 %v3231_v3  ;;  %v492_v3 = vrot.slane %v476_v54, %v3576_v47  ;;  %v3284_v4 = vld [vmem:[%s4226_s2 + $0x340] sm:$0xff]   ;;  %v2347_v54 = vld [vmem:[%s4229_s5 + $0x8] sm:$0xff] }
  0x2f   :  { %2903 = vmatprep.subr.bf16.mxu1 %v3233_v5  ;;  %v3285_v5 = vld [vmem:[%s4226_s2 + $0x3c0] sm:$0xff]   ;;  %v2350_v58 = vadd.f32 %v2348_v55, %v2347_v54 }
  0x31   :  { %2882 = vmatpush3.bf16.msra.mxu0 %v3234_v6  ;;  %v513_v6 = vrot.slane %v485_v63, %v3576_v47  ;;  %v3330_v63 = vld [vmem:[%s4226_s2 + $0x4d8] sm:$0xff]  }
  0x32   :  { %2883 = vmatprep.subr.bf16.mxu0 %v3236_v8  ;;  %2904 = vmatpush3.bf16.msra.mxu1 %v3235_v7  ;;  %v3286_v7 = vld [vmem:[%s4226_s2 + $0x300] sm:$0xff]  }
  0x33   :  { %2905 = vmatprep.subr.bf16.mxu1 %v3237_v9  ;;  %v3287_v8 = vld [vmem:[%s4226_s2 + $0x380] sm:$0xff]   ;;  %v514_v9 = vcombine.high %v492_v3, %v492_v3 }
  0x35   :  { %2884 = vmatpush3.bf16.msra.mxu0 %v3238_v10  ;;  %v3288_v10 = vld [vmem:[%s4226_s2 + $0x348] sm:$0xff]  }
  0x36   :  { %2885 = vmatprep.subr.bf16.mxu0 %v3240_v12  ;;  %2906 = vmatpush3.bf16.msra.mxu1 %v3239_v11  ;;  %v3289_v11 = vld [vmem:[%s4226_s2 + $0x3c8] sm:$0xff]   ;;  %v517_v12 = vcombine.high %v513_v6, %v513_v6 }
  0x37   :  { %2907 = vmatprep.subr.bf16.mxu1 %v3241_v13  ;;  %v3290_v13 = vld [vmem:[%s4226_s2 + $0x308] sm:$0xff]  }
  0x39   :  { %2886 = vmatpush3.bf16.msra.mxu0 %v3242_v14  ;;  %v3291_v14 = vld [vmem:[%s4226_s2 + $0x388] sm:$0xff]  }
  0x3a   :  { %2887 = vmatprep.subr.bf16.mxu0 %v3244_v16  ;;  %2908 = vmatpush3.bf16.msra.mxu1 %v3243_v15  ;;  %v3292_v15 = vld [vmem:[%s4226_s2 + $0x350] sm:$0xff]  }
  0x3b   :  { %2909 = vmatprep.subr.bf16.mxu1 %v3245_v17  ;;  %v3293_v16 = vld [vmem:[%s4226_s2 + $0x3d0] sm:$0xff]  }
  0x3c   :  { %v3294_v17 = vld [vmem:[%s4226_s2 + $0x310] sm:$0xff]  }
  0x3d   :  { %2888 = vmatpush3.bf16.msra.mxu0 %v3246_v18  ;;  %v3295_v18 = vld [vmem:[%s4226_s2 + $0x390] sm:$0xff]  }
  0x3e   :  { %2889 = vmatprep.subr.bf16.mxu0 %v3248_v20  ;;  %2910 = vmatpush3.bf16.msra.mxu1 %v3247_v19  ;;  %v3296_v19 = vld [vmem:[%s4226_s2 + $0x358] sm:$0xff]  }
  0x3f   :  { %2911 = vmatprep.subr.bf16.mxu1 %v3249_v21  ;;  %v3297_v20 = vld [vmem:[%s4226_s2 + $0x3d8] sm:$0xff]  }
  0x40   :  { %v3298_v21 = vld [vmem:[%s4226_s2 + $0x318] sm:$0xff]  }
  0x41   :  { %2890 = vmatpush3.bf16.msra.mxu0 %v3250_v22  ;;  %v3299_v22 = vld [vmem:[%s4226_s2 + $0x398] sm:$0xff]  }
  0x42   :  { %2919 = vmatprep.subr.bf16.mxu0 %v3252_v25  ;;  %2912 = vmatpush3.bf16.msra.mxu1 %v3251_v23  ;;  %v3300_v23 = vld [vmem:[%s4226_s2 + $0x360] sm:$0xff]  }
  0x43   :  { %2941 = vmatprep.subr.bf16.mxu1 %v3253_v26  ;;  %v3302_v25 = vld [vmem:[%s4226_s2 + $0x320] sm:$0xff]  }
  0x44   :  { %1856 = vmatmul.mubr.bf16.vlgmr.msra.gmra.mrb[4].mxu0 %v450_v24  ;;  %v3301_v24 = vld [vmem:[%s4226_s2 + $0x3e0] sm:$0xff]  }
  0x45   :  { %2920 = vmatpush3.bf16.msra.mxu0 %v3254_v27  ;;  %1896 = vmatmul.mubr.bf16.vlgmr.msra.gmra.mrb[4].mxu1 %v466_v29  ;;  %v3303_v26 = vld [vmem:[%s4226_s2 + $0x3a0] sm:$0xff]   ;;  %v3304_v27 = vld [vmem:[%s4226_s2 + $0x368] sm:$0xff]  }
  0x46   :  { %2921 = vmatprep.subr.bf16.mxu0 %v3256_v30  ;;  %2942 = vmatpush3.bf16.msra.mxu1 %v3255_v28  ;;  %v3305_v28 = vld [vmem:[%s4226_s2 + $0x3e8] sm:$0xff]  }
  0x47   :  { %2943 = vmatprep.subr.bf16.mxu1 %v3257_v31  ;;  %1935 = vmatprep.mubr.bf16.mxu0 %v506_v62  ;;  %v3306_v29 = vld [vmem:[%s4226_s2 + $0x328] sm:$0xff]   ;;  %v3308_v31 = vld [vmem:[%s4226_s2 + $0x370] sm:$0xff]  }
  0x48   :  { %1975 = vmatprep.mubr.bf16.mxu1 %v516_v2  ;;  %v3307_v30 = vld [vmem:[%s4226_s2 + $0x3a8] sm:$0xff]   ;;  %v3331_v2 = vld [vmem:[%s4226_s2 + $0x418] sm:$0xff]  }
  0x49   :  { %2922 = vmatpush3.bf16.msra.mxu0 %v3258_v32  ;;  %v3309_v32 = vld [vmem:[%s4226_s2 + $0x3f0] sm:$0xff]  }
  0x4a   :  { %2923 = vmatprep.subr.bf16.mxu0 %v3260_v34  ;;  %2944 = vmatpush3.bf16.msra.mxu1 %v3259_v33  ;;  %v3310_v33 = vld [vmem:[%s4226_s2 + $0x330] sm:$0xff]  }
  0x4b   :  { %2945 = vmatprep.subr.bf16.mxu1 %v3261_v35  ;;  %v3311_v34 = vld [vmem:[%s4226_s2 + $0x3b0] sm:$0xff]   ;;  %v3312_v35 = vld [vmem:[%s4226_s2 + $0x378] sm:$0xff]  }
  0x4d   :  { %2924 = vmatpush3.bf16.msra.mxu0 %v3262_v36  ;;  %v3313_v36 = vld [vmem:[%s4226_s2 + $0x3f8] sm:$0xff]  }
  0x4e   :  { %2925 = vmatprep.subr.bf16.mxu0 %v3264_v38  ;;  %2946 = vmatpush3.bf16.msra.mxu1 %v3263_v37  ;;  %v3314_v37 = vld [vmem:[%s4226_s2 + $0x338] sm:$0xff]  }
  0x4f   :  { %2947 = vmatprep.subr.bf16.mxu1 %v3265_v39  ;;  %v3315_v38 = vld [vmem:[%s4226_s2 + $0x3b8] sm:$0xff]   ;;  %v499_v39 = vrot.slane %v3768_v59, %v3576_v47  ;;  %v3328_v59 = vld [vmem:[%s4226_s2 + $0x490] sm:$0xff]  }
  0x51   :  { %2926 = vmatpush3.bf16.msra.mxu0 %v3266_v40  ;;  %v3317_v40 = vld [vmem:[%s4226_s2 + $0x440] sm:$0xff]  }
  0x52   :  { %2927 = vmatprep.subr.bf16.mxu0 %v3268_v42  ;;  %2948 = vmatpush3.bf16.msra.mxu1 %v3267_v41  ;;  %v3318_v41 = vld [vmem:[%s4226_s2 + $0x4c0] sm:$0xff]  }
  0x53   :  { %2949 = vmatprep.subr.bf16.mxu1 %v3269_v43  ;;  %v3319_v42 = vld [vmem:[%s4226_s2 + $0x400] sm:$0xff]  }
  0x54   :  { %v3320_v43 = vld [vmem:[%s4226_s2 + $0x480] sm:$0xff]  }
  0x55   :  { %2928 = vmatpush3.bf16.msra.mxu0 %v3270_v44  ;;  %v515_v44 = vcombine.high %v499_v39, %v499_v39 }
  0x56   :  { %2929 = vmatprep.subr.bf16.mxu0 %v3272_v46  ;;  %2950 = vmatpush3.bf16.msra.mxu1 %v3271_v45  ;;  %v3321_v45 = vld [vmem:[%s4226_s2 + $0x448] sm:$0xff]  }
  0x57   :  { %2951 = vmatprep.subr.bf16.mxu1 %v3273_v48  ;;  %v3322_v46 = vld [vmem:[%s4226_s2 + $0x4c8] sm:$0xff]  }
  0x58   :  { %v3323_v48 = vld [vmem:[%s4226_s2 + $0x408] sm:$0xff]  }
  0x59   :  { %2930 = vmatpush3.bf16.msra.mxu0 %v3274_v49  ;;  %v3324_v49 = vld [vmem:[%s4226_s2 + $0x488] sm:$0xff]  }
  0x5a   :  { %2931 = vmatprep.subr.bf16.mxu0 %v3276_v51  ;;  %2952 = vmatpush3.bf16.msra.mxu1 %v3275_v50  ;;  %v3325_v50 = vld [vmem:[%s4226_s2 + $0x450] sm:$0xff]  }
  0x5b   :  { %2953 = vmatprep.subr.bf16.mxu1 %v3277_v53 }
  0x5d   :  { %2932 = vmatpush3.bf16.msra.mxu0 %v3278_v56  ;;  %v3327_v56 = vld [vmem:[%s4226_s2 + $0x410] sm:$0xff]  }
  0x5e   :  { %2933 = vmatprep.subr.bf16.mxu0 %v3280_v60  ;;  %2954 = vmatpush3.bf16.msra.mxu1 %v3279_v57 }
  0x5f   :  { %2955 = vmatprep.subr.bf16.mxu1 %v3281_v61  ;;  %v3329_v61 = vld [vmem:[%s4226_s2 + $0x458] sm:$0xff]  }
  0x61   :  { %2934 = vmatpush3.bf16.msra.mxu0 %v3282_v0  ;;  %v2346_v0 = vld [vmem:[%s4229_s5] sm:$0xff] }
  0x62   :  { %2963 = vmatprep.subr.bf16.mxu0 %v3284_v4  ;;  %2956 = vmatpush3.bf16.msra.mxu1 %v3283_v1  ;;  %v2349_v4 = vadd.f32 %v2348_v55, %v2346_v0  ;;  %v3356_v0 = vld [vmem:[%s4226_s2 + $0x588] sm:$0xff]  }
  0x63   :  { %2985 = vmatprep.subr.bf16.mxu1 %v3285_v5  ;;  %v3332_v5 = vld [vmem:[%s4226_s2 + $0x498] sm:$0xff]  }
  0x64   :  { %1936 = vmatmul.mubr.bf16.vlgmr.msra.gmra.mrb[8].mxu0 %v492_v3 }
  0x65   :  { %2964 = vmatpush3.bf16.msra.mxu0 %v3286_v7  ;;  %2015 = vmatprep.mubr.bf16.mxu0 %v513_v6  ;;  %v3333_v7 = vld [vmem:[%s4226_s2 + $0x460] sm:$0xff]  }
  0x66   :  { %1976 = vmatmul.mubr.bf16.vlgmr.msra.gmra.mrb[8].mxu1 %v514_v9  ;;  %2965 = vmatprep.subr.bf16.mxu0 %v3288_v10  ;;  %v3334_v10 = vld [vmem:[%s4226_s2 + $0x4e0] sm:$0xff]  }
  0x67   :  { %2986 = vmatpush3.bf16.msra.mxu1 %v3287_v8  ;;  %2055 = vmatprep.mubr.bf16.mxu1 %v517_v12 }
  0x68   :  { %2987 = vmatprep.subr.bf16.mxu1 %v3289_v11  ;;  %v3335_v11 = vld [vmem:[%s4226_s2 + $0x420] sm:$0xff]  }
  0x69   :  { %2966 = vmatpush3.bf16.msra.mxu0 %v3290_v13 }
  0x6a   :  { %2967 = vmatprep.subr.bf16.mxu0 %v3292_v15  ;;  %v3337_v15 = vld [vmem:[%s4226_s2 + $0x468] sm:$0xff]  }
  0x6b   :  { %2988 = vmatpush3.bf16.msra.mxu1 %v3291_v14 }
  0x6c   :  { %2989 = vmatprep.subr.bf16.mxu1 %v3293_v16 }
  0x6d   :  { %2968 = vmatpush3.bf16.msra.mxu0 %v3294_v17  ;;  %v3336_v17 = vld [vmem:[%s4226_s2 + $0x4a0] sm:$0xff]  }
  0x6e   :  { %2969 = vmatprep.subr.bf16.mxu0 %v3296_v19  ;;  %v3338_v19 = vld [vmem:[%s4226_s2 + $0x4e8] sm:$0xff]  }
  0x6f   :  { %2990 = vmatpush3.bf16.msra.mxu1 %v3295_v18 }
  0x70   :  { %2991 = vmatprep.subr.bf16.mxu1 %v3297_v20 }
  0x71   :  { %2970 = vmatpush3.bf16.msra.mxu0 %v3298_v21 }
  0x72   :  { %2971 = vmatprep.subr.bf16.mxu0 %v3300_v23  ;;  %v3341_v23 = vld [vmem:[%s4226_s2 + $0x470] sm:$0xff]  }
  0x73   :  { %2992 = vmatpush3.bf16.msra.mxu1 %v3299_v22  ;;  %v3339_v22 = vld [vmem:[%s4226_s2 + $0x428] sm:$0xff]  }
  0x74   :  { %2993 = vmatprep.subr.bf16.mxu1 %v3301_v24 }
  0x75   :  { %2972 = vmatpush3.bf16.msra.mxu0 %v3302_v25 }
  0x76   :  { %2973 = vmatprep.subr.bf16.mxu0 %v3304_v27  ;;  %v3340_v27 = vld [vmem:[%s4226_s2 + $0x4a8] sm:$0xff]  }
  0x77   :  { %2994 = vmatpush3.bf16.msra.mxu1 %v3303_v26 }
  0x78   :  { %2995 = vmatprep.subr.bf16.mxu1 %v3305_v28  ;;  %v3342_v28 = vld [vmem:[%s4226_s2 + $0x4f0] sm:$0xff]  }
  0x79   :  { %2974 = vmatpush3.bf16.msra.mxu0 %v3306_v29  ;;  %v32_v29 = vld [vmem:[%s4225_s1 + $0x10] sm:$0xff] }
  0x7a   :  { %2975 = vmatprep.subr.bf16.mxu0 %v3308_v31  ;;  %v2362_v1 = vpop.permute.xlu1 %2361  ;;  %v3343_v31 = vld [vmem:[%s4226_s2 + $0x430] sm:$0xff]  }
  0x7b   :  { %2996 = vmatpush3.bf16.msra.mxu1 %v3307_v30  ;;  %v2370_v8 = vmul.f32 %v2362_v1, %v2349_v4  ;;  %v3358_v1 = vld [vmem:[%s4226_s2 + $0x5d0] sm:$0xff]  }
  0x7c   :  { %2997 = vmatprep.subr.bf16.mxu1 %v3309_v32  ;;  %v525_v32 = vrot.slane %v32_v29, %v3576_v47  ;;  %v3360_v4 = vld [vmem:[%s4226_s2 + $0x590] sm:$0xff]  }
  0x7d   :  { %2976 = vmatpush3.bf16.msra.mxu0 %v3310_v33  ;;  %v2372_v12 = vsel %vm2263_vm1, %v2370_v8, 0.0  ;;  %v3364_v8 = vld [vmem:[%s4226_s2 + $0x598] sm:$0xff]  }
  0x7e   :  { %2977 = vmatprep.subr.bf16.mxu0 %v3312_v35  ;;  %v2373_v14 = vrot.slane %v2372_v12, 4 }
  0x7f   :  { %2998 = vmatpush3.bf16.msra.mxu1 %v3311_v34  ;;  %v518_v34 = vcombine.high %v32_v29, %v32_v29 }
  0x80   :  { %2999 = vmatprep.subr.bf16.mxu1 %v3313_v36  ;;  %v2374_v18 = vadd.f32 %v2373_v14, %v2372_v12  ;;  %v3345_v36 = vld [vmem:[%s4226_s2 + $0x478] sm:$0xff]   ;;  %v3368_v12 = vld [vmem:[%s4226_s2 + $0x5a0] sm:$0xff]   ;;  %v3371_v14 = vld [vmem:[%s4226_s2 + $0x528] sm:$0xff]  }
  0x81   :  { %2978 = vmatpush3.bf16.msra.mxu0 %v3314_v37 }
  0x82   :  { %3007 = vmatprep.subr.bf16.mxu0 %v3317_v40  ;;  %v2375_v21 = vrot.slane %v2374_v18, 2 }
  0x83   :  { %3000 = vmatpush3.bf16.msra.mxu1 %v3315_v38  ;;  %v3344_v38 = vld [vmem:[%s4226_s2 + $0x4b0] sm:$0xff]  }
  0x84   :  { %2016 = vmatmul.mubr.bf16.vlgmr.msra.gmra.mrb[12].mxu0 %v499_v39  ;;  %3029 = vmatprep.subr.bf16.mxu1 %v3318_v41  ;;  %v2376_v26 = vadd.f32 %v2375_v21, %v2374_v18  ;;  %v533_v39 = vcombine.high %v525_v32, %v525_v32  ;;  %v3346_v41 = vld [vmem:[%s4226_s2 + $0x4f8] sm:$0xff]  }
  0x85   :  { %3008 = vmatpush3.bf16.msra.mxu0 %v3319_v42  ;;  %v3994_v42 = vrot.slane %v518_v34, %v3576_v47 }
  0x86   :  { %2056 = vmatmul.mubr.bf16.vlgmr.msra.gmra.mrb[12].mxu1 %v515_v44  ;;  %3009 = vmatprep.subr.bf16.mxu0 %v3321_v45  ;;  %v2377_v30 = vrot.slane %v2376_v26, 1  ;;  %v555_v44 = vrot.slane %v533_v39, %v3576_v47 }
  0x87   :  { %3030 = vmatpush3.bf16.msra.mxu1 %v3320_v43  ;;  %v3347_v43 = vld [vmem:[%s4226_s2 + $0x438] sm:$0xff]  }
  0x88   :  { %3031 = vmatprep.subr.bf16.mxu1 %v3322_v46  ;;  %v2378_v37 = vadd.f32 %v2377_v30, %v2376_v26  ;;  %v541_v46 = vrot.slane %v525_v32, %v3576_v47  ;;  %2095 = vmatprep.mubr.bf16.mxu0 %v555_v44 }
  0x89   :  { %3010 = vmatpush3.bf16.msra.mxu0 %v3323_v48  ;;  %v3349_v48 = vld [vmem:[%s4226_s2 + $0x540] sm:$0xff]  }
  0x8a   :  { %3011 = vmatprep.subr.bf16.mxu0 %v3325_v50  ;;  %v3348_v50 = vld [vmem:[%s4226_s2 + $0x4b8] sm:$0xff]  }
  0x8b   :  { %3032 = vmatpush3.bf16.msra.mxu1 %v3324_v49  ;;  %v534_v49 = vcombine.high %v3994_v42, %v3994_v42 }
  0x8c   :  { %3033 = vmatprep.subr.bf16.mxu1 %v3326_v52 }
  0x8d   :  { %3012 = vmatpush3.bf16.msra.mxu0 %v3327_v56  ;;  %v562_v55 = vrot.slane %v534_v49, %v3576_v47  ;;  %v3351_v56 = vld [vmem:[%s4226_s2 + $0x500] sm:$0xff]  }
  0x8e   :  { %3013 = vmatprep.subr.bf16.mxu0 %v3329_v61  ;;  %v3354_v61 = vld [vmem:[%s4226_s2 + $0x5c8] sm:$0xff]  }
  0x8f   :  { %3034 = vmatpush3.bf16.msra.mxu1 %v3328_v59  ;;  %v3352_v59 = vld [vmem:[%s4226_s2 + $0x580] sm:$0xff]  }
  0x90   :  { %v2354_v51 = vpop.xlane.xlu0 %2353  ;;  %3035 = vmatprep.subr.bf16.mxu1 %v3330_v63  ;;  %v3357_v63 = vld [vmem:[%s4226_s2 + $0x550] sm:$0xff]  }
  0x91   :  { %v2355_v53 = vmax.f32 %v2354_v51, 1.0  ;;  %3014 = vmatpush3.bf16.msra.mxu0 %v3331_v2  ;;  %v565_v51 = vcombine.high %v555_v44, %v555_v44  ;;  %v3359_v2 = vld [vmem:[%s4226_s2 + $0x510] sm:$0xff]  }
  0x92   :  { %3015 = vmatprep.subr.bf16.mxu0 %v3333_v7  ;;  %v3365_v7 = vld [vmem:[%s4226_s2 + $0x560] sm:$0xff]  }
  0x93   :  { %v2387_v57 = vrot.slane %v2355_v53, 1  ;;  %3036 = vmatpush3.bf16.msra.mxu1 %v3332_v5  ;;  %2135 = vmatprep.mubr.bf16.mxu1 %v565_v51  ;;  %v3362_v5 = vld [vmem:[%s4226_s2 + $0x5d8] sm:$0xff]  }
  0x94   :  { %v2369_v60 = vpop.permute.xlu0 %2368  ;;  %3037 = vmatprep.subr.bf16.mxu1 %v3334_v10  ;;  %v3367_v10 = vld [vmem:[%s4226_s2 + $0x520] sm:$0xff]  }
  0x95   :  { %v2371_v62 = vmul.f32 %v2369_v60, %v2350_v58  ;;  %3382 = vrcp.f32 %v2387_v57  ;;  %3016 = vmatpush3.bf16.msra.mxu0 %v3335_v11  ;;  %v563_v57 = vcombine.high %v541_v46, %v541_v46  ;;  %v3353_v58 = vld [vmem:[%s4226_s2 + $0x548] sm:$0xff]   ;;  %v566_v60 = vcombine.high %v562_v55, %v562_v55 }
  0x96   :  { %3384 = vrcp.f32 %v2355_v53  ;;  %3017 = vmatprep.subr.bf16.mxu0 %v3337_v15  ;;  %v3350_v53 = vld [vmem:[%s4226_s2 + $0x5c0] sm:$0xff]   ;;  %v3369_v11 = vld [vmem:[%s4226_s2 + $0x568] sm:$0xff]   ;;  %v3373_v15 = vld [vmem:[%s4226_s2 + $0x570] sm:$0xff]  }
  0x97   :  { %v2379_v3 = vsel %vm2263_vm1, %v2371_v62, 0.0  ;;  %3038 = vmatpush3.bf16.msra.mxu1 %v3336_v17  ;;  %v3355_v62 = vld [vmem:[%s4226_s2 + $0x508] sm:$0xff]   ;;  %v3374_v17 = vld [vmem:[%s4226_s2 + $0x5f0] sm:$0xff]  }
  0x98   :  { %v2380_v6 = vrot.slane %v2379_v3, 4  ;;  %3039 = vmatprep.subr.bf16.mxu1 %v3338_v19 }
  0x99   :  { %3018 = vmatpush3.bf16.msra.mxu0 %v3339_v22 }
  0x9a   :  { %v2381_v9 = vadd.f32 %v2380_v6, %v2379_v3  ;;  %3019 = vmatprep.subr.bf16.mxu0 %v3341_v23  ;;  %v3361_v3 = vld [vmem:[%s4226_s2 + $0x558] sm:$0xff]  }
  0x9b   :  { %3040 = vmatpush3.bf16.msra.mxu1 %v3340_v27  ;;  %v3363_v6 = vld [vmem:[%s4226_s2 + $0x518] sm:$0xff]  }
  0x9c   :  { %v2382_v13 = vrot.slane %v2381_v9, 2  ;;  %3041 = vmatprep.subr.bf16.mxu1 %v3342_v28 }
  0x9d   :  { %3020 = vmatpush3.bf16.msra.mxu0 %v3343_v31 }
  0x9e   :  { %v2383_v16 = vadd.f32 %v2382_v13, %v2381_v9  ;;  %3021 = vmatprep.subr.bf16.mxu0 %v3345_v36  ;;  %v3366_v9 = vld [vmem:[%s4226_s2 + $0x5e0] sm:$0xff]   ;;  %v3370_v13 = vld [vmem:[%s4226_s2 + $0x5e8] sm:$0xff]  }
  0x9f   :  { %v3383_v24 = vpop.eup %3382  ;;  %3042 = vmatpush3.bf16.msra.mxu1 %v3344_v38 }
  0xa0   :  { %v2384_v20 = vrot.slane %v2383_v16, 1  ;;  %v3385_v35 = vpop.eup %3384  ;;  %3043 = vmatprep.subr.bf16.mxu1 %v3346_v41 }
  0xa1   :  { %v4000_v45 = vmul.f32 %v3385_v35, %v2378_v37  ;;  %3022 = vmatpush3.bf16.msra.mxu0 %v3347_v43 }
  0xa2   :  { %v2385_v25 = vadd.f32 %v2384_v20, %v2383_v16  ;;  %3051 = vmatprep.subr.bf16.mxu0 %v3349_v48  ;;  %v3372_v16 = vld [vmem:[%s4226_s2 + $0x5a8] sm:$0xff]  }
  0xa3   :  { %3044 = vmatpush3.bf16.msra.mxu1 %v3348_v50 }
  0xa4   :  { %v3981_v33 = vmul.f32 %v3383_v24, %v2385_v25  ;;  %2096 = vmatmul.mubr.bf16.vlgmr.msra.gmra.mrb[16].mxu0 %v541_v46  ;;  %3073 = vmatprep.subr.bf16.mxu1 %v3350_v53 }
  0xa5   :  { %3052 = vmatpush3.bf16.msra.mxu0 %v3351_v56  ;;  %2175 = vmatprep.mubr.bf16.mxu0 %v562_v55 }
  0xa6   :  { %v2398_v40 = vrot.slane %v3981_v33, 7  ;;  %2136 = vmatmul.mubr.bf16.vlgmr.msra.gmra.mrb[16].mxu1 %v563_v57  ;;  %3053 = vmatprep.subr.bf16.mxu0 %v3353_v58 }
  0xa7   :  { %3074 = vmatpush3.bf16.msra.mxu1 %v3352_v59  ;;  %2215 = vmatprep.mubr.bf16.mxu1 %v566_v60 }
  0xa8   :  { %v2400_v52 = vsel %vm2399_vm2, %v2398_v40, %v4000_v45  ;;  %3075 = vmatprep.subr.bf16.mxu1 %v3354_v61 }
  0xa9   :  { %v2402_v54 = vsel %vm2230_vm3, %v2400_v52, 0.0  ;;  %3054 = vmatpush3.bf16.msra.mxu0 %v3355_v62 }
  0xaa   :  { %2403 = vadd.xlane.f32.xlu1 %v2402_v54  ;;  %3055 = vmatprep.subr.bf16.mxu0 %v3357_v63 }
  0xab   :  { %3076 = vmatpush3.bf16.msra.mxu1 %v3356_v0 }
  0xac   :  { %3077 = vmatprep.subr.bf16.mxu1 %v3358_v1 }
  0xad   :  { %3056 = vmatpush3.bf16.msra.mxu0 %v3359_v2 }
  0xae   :  { %3057 = vmatprep.subr.bf16.mxu0 %v3361_v3 }
  0xaf   :  { %3078 = vmatpush3.bf16.msra.mxu1 %v3360_v4 }
  0xb0   :  { %3079 = vmatprep.subr.bf16.mxu1 %v3362_v5 }
  0xb1   :  { %3058 = vmatpush3.bf16.msra.mxu0 %v3363_v6 }
  0xb2   :  { %3059 = vmatprep.subr.bf16.mxu0 %v3365_v7 }
  0xb3   :  { %3080 = vmatpush3.bf16.msra.mxu1 %v3364_v8 }
  0xb4   :  { %3081 = vmatprep.subr.bf16.mxu1 %v3366_v9 }
  0xb5   :  { %3060 = vmatpush3.bf16.msra.mxu0 %v3367_v10 }
  0xb6   :  { %3061 = vmatprep.subr.bf16.mxu0 %v3369_v11 }
  0xb7   :  { %3082 = vmatpush3.bf16.msra.mxu1 %v3368_v12 }
  0xb8   :  { %3083 = vmatprep.subr.bf16.mxu1 %v3370_v13 }
  0xb9   :  { %13 = vsyncpa [#allocation4], 0  ;;  %3062 = vmatpush3.bf16.msra.mxu0 %v3371_v14  ;;  %v3375_v18 = vld [vmem:[%s4226_s2 + $0x530] sm:$0xff]   ;;  %v3377_v19 = vld [vmem:[%s4226_s2 + $0x578] sm:$0xff]   ;;  %v548_v23 = vrot.slane %v3994_v42, %v3576_v47  ;;  %vm3420_vm4 = vmmov 0   ;;  %vm2338_vm5 = vcmask 254976  }
  0xba   :  { %3063 = vmatprep.subr.bf16.mxu0 %v3373_v15  ;;  %v3376_v20 = vld [vmem:[%s4226_s2 + $0x5b0] sm:$0xff]   ;;  %v3378_v21 = vld [vmem:[%s4226_s2 + $0x5f8] sm:$0xff]   ;;  %vm2535_vm6 = vcmask 261120   ;;  %s3422_s19 = smov [#allocation3]   ;;  %vm2614_vm7 = vcmask 9216  }
  0xbb   :  { %3084 = vmatpush3.bf16.msra.mxu1 %v3372_v16  ;;  %v3379_v22 = vld [vmem:[%s4226_s2 + $0x538] sm:$0xff]   ;;  %v564_v25 = vcombine.high %v548_v23, %v548_v23  ;;  %s2622_s20 = sshll.u32 %s3422_s19, 4  ;;  %s2623_s20 = int_to_ptr.vmem [resolvable:$true] %s2622_s20 }
  0xbc   :  { %3085 = vmatprep.subr.bf16.mxu1 %v3374_v17  ;;  %v3380_v24 = vld [vmem:[%s4226_s2 + $0x5b8] sm:$0xff]   ;;  %v2443_v17 = vld [vmem:[%s4228_s4 + $0x40] sm:$0xff]  ;;  %s3394_s21 = scalar_lea.vmem %s2623_s20, 32  ;;  %p3399_p1 = scmp.lt.s32.totalorder %s2623_s20, %s2623_s20 }
  0xbd   :  { %3064 = vmatpush3.bf16.msra.mxu0 %v3375_v18  ;;  %v2444_v18 = vld [vmem:[%s4228_s4 + $0x48] sm:$0xff]  ;;  %p3395_p0 = scmp.ne.s32.totalorder %s2623_s20, %s3394_s21  ;;  %p3400_p2 = scmp.lt.s32.totalorder %s3394_s21, %s3394_s21 }
  0xbe   :  { %3065 = vmatprep.subr.bf16.mxu0 %v3377_v19  ;;  %v2445_v19 = vld [vmem:[%s4228_s4 + $0x50] sm:$0xff] }
  0xbf   :  { %3086 = vmatpush3.bf16.msra.mxu1 %v3376_v20  ;;  %p3401_p3 = por %p3400_p2, %p3399_p1 }
  0xc0   :  { %3087 = vmatprep.subr.bf16.mxu1 %v3378_v21  ;;  %v3419_v21 = vmov 0.0|0.0  }
  0xc1   :  { %3066 = vmatpush3.bf16.msra.mxu0 %v3379_v22  ;;  %v3171_v22 = vpack.c.bf16 %v2444_v18, %v2443_v17  ;;  %v2256_v17 = vld [vmem:[%s4228_s4 + $0x8] sm:$0xff]  ;;  %p3402_p4 = pnand %p3401_p3, %p3395_p0 }
  0xc2   :  { %3158 = vmatprep.subr.bf16.mxu0 %v3419_v21 }
  0xc3   :  { %3088 = vmatpush3.bf16.msra.mxu1 %v3380_v24 }
  0xc4   :  { %2176 = vmatmul.mubr.bf16.vlgmr.msra.gmra.mrb[20].mxu0 %v548_v23  ;;  %3170 = vmatprep.subr.bf16.mxu1 %v3419_v21  ;;  %v2446_v23 = vld [vmem:[%s4228_s4 + $0x58] sm:$0xff] }
  0xc6   :  { %2216 = vmatmul.mubr.bf16.vlgmr.msra.gmra.mrb[20].mxu1 %v564_v25  ;;  %v3421_v25 = vmov 0.0  }
  0xc7   :  { %3150 = vmatprep.mubr.msk.f32.mxu1 %vm3420_vm4, %v3421_v25  ;;  %3131 = vmatprep.mubr.msk.f32.mxu0 %vm3420_vm4, %v3421_v25 }
  0xc8   :  { %3172 = vmatpush3.bf16.msra.mxu1 %v3171_v22 }
  0xc9   :  { %3173 = vmatprep.subr.bf16.mxu1 %v3419_v21 }
  0xf7   :  { %v2847_v26 = vpop.f32.mrb[0].mxu0 }
  0xf8   :  { %v2848_v27 = vpop.f32.mrb[1].mxu0  ;;  %v2869_v28 = vpop.f32.mrb[0].mxu1 }
  0xf9   :  { %v2849_v29 = vadd.f32 %v2848_v27, %v2847_v26  ;;  %v2850_v30 = vpop.f32.mrb[2].mxu0  ;;  %v2870_v31 = vpop.f32.mrb[1].mxu1  ;;  %v3174_v26 = vpack.c.bf16 %v2446_v23, %v2445_v19  ;;  %v2447_v27 = vld [vmem:[%s4228_s4 + $0x60] sm:$0xff]  ;;  %v2257_v19 = vld [vmem:[%s4228_s4 + $0x10] sm:$0xff] }
  0xfa   :  { %v2851_v32 = vpop.f32.mrb[3].mxu0  ;;  %v2871_v34 = vadd.f32 %v2870_v31, %v2869_v28  ;;  %v2872_v47 = vpop.f32.mrb[2].mxu1  ;;  %v2448_v28 = vld [vmem:[%s4228_s4 + $0x68] sm:$0xff]  ;;  %v2449_v30 = vld [vmem:[%s4228_s4 + $0x70] sm:$0xff]  ;;  %v2450_v31 = vld [vmem:[%s4228_s4 + $0x78] sm:$0xff] }
  0xfb   :  { %v2873_v35 = vpop.f32.mrb[3].mxu1  ;;  %3175 = vmatpush3.bf16.msra.mxu1 %v3174_v26  ;;  %v3180_v32 = vpack.c.bf16 %v2450_v31, %v2449_v30  ;;  %v2259_v23 = vld [vmem:[%s4228_s4 + $0x20] sm:$0xff] }
  0xfc   :  { %v1818_v36 = vadd.f32 %v2871_v34, %v2849_v29  ;;  %v3177_v29 = vpack.c.bf16 %v2448_v28, %v2447_v27  ;;  %3176 = vmatprep.subr.bf16.mxu1 %v3419_v21  ;;  %v2261_v27 = vld [vmem:[%s4228_s4 + $0x30] sm:$0xff]  ;;  %v2262_v28 = vld [vmem:[%s4228_s4 + $0x38] sm:$0xff] }
  0xff   :  { %3178 = vmatpush3.bf16.msra.mxu1 %v3177_v29  ;;  %v3168_v29 = vpack.c.bf16 %v2262_v28, %v2261_v27 }
 0x100   :  { %3179 = vmatprep.subr.bf16.mxu1 %v3419_v21 }
 0x103   :  { %3181 = vmatpush3.bf16.msra.mxu1 %v3180_v32 }
 0x117   :  { %v2891_v37 = vpop.f32.mrb[4].mxu0 }
 0x118   :  { %v2892_v38 = vpop.f32.mrb[5].mxu0  ;;  %v2913_v39 = vpop.f32.mrb[4].mxu1 }
 0x119   :  { %v2893_v40 = vadd.f32 %v2892_v38, %v2891_v37  ;;  %v2894_v41 = vpop.f32.mrb[6].mxu0  ;;  %v2914_v42 = vpop.f32.mrb[5].mxu1 }
 0x11a   :  { %v2895_v43 = vpop.f32.mrb[7].mxu0  ;;  %v2915_v46 = vadd.f32 %v2914_v42, %v2913_v39  ;;  %v2916_v48 = vpop.f32.mrb[6].mxu1 }
 0x11b   :  { %v1858_v44 = vadd.f32 %v2893_v40, %v1818_v36  ;;  %v2917_v49 = vpop.f32.mrb[7].mxu1 }
 0x11d   :  { %v1898_v50 = vadd.f32 %v2915_v46, %v1858_v44 }
 0x137   :  { %v2404_v51 = vpop.xlane.xlu1 %2403  ;;  %v2935_v58 = vpop.f32.mrb[8].mxu0 }
 0x138   :  { %v2405_v52 = vmul.f32 0.015625, %v2404_v51  ;;  %v2936_v59 = vpop.f32.mrb[9].mxu0 }
 0x139   :  { %v2957_v61 = vpop.f32.mrb[8].mxu1  ;;  %v2937_v62 = vadd.f32 %v2936_v59, %v2935_v58  ;;  %v2938_v63 = vpop.f32.mrb[10].mxu0 }
 0x13a   :  { %v2407_v53 = vrot.slane %v2405_v52, 1  ;;  %v4111_v54 = vsub.f32 %v4000_v45, %v2405_v52  ;;  %v2958_v0 = vpop.f32.mrb[9].mxu1  ;;  %v2939_v1 = vpop.f32.mrb[11].mxu0 }
 0x13b   :  { %v1938_v2 = vadd.f32 %v2937_v62, %v1898_v50  ;;  %v2959_v3 = vadd.f32 %v2958_v0, %v2957_v61 }
 0x13c   :  { %v4114_v55 = vsub.f32 %v3981_v33, %v2407_v53  ;;  %v2412_v56 = vmul.f32 %v4111_v54, %v4111_v54  ;;  %v2960_v33 = vpop.f32.mrb[10].mxu1 }
 0x13d   :  { %v2961_v5 = vpop.f32.mrb[11].mxu1  ;;  %v1978_v6 = vadd.f32 %v2959_v3, %v1938_v2 }
 0x13e   :  { %v2413_v57 = vmul.f32 %v4114_v55, %v4114_v55 }
 0x140   :  { %v2416_v60 = vrot.slane %v2413_v57, 7 }
 0x142   :  { %v2417_v45 = vsel %vm2399_vm2, %v2416_v60, %v2412_v56  ;;  %v2822_v60 = vld [vmem:[%s4227_s3] ss:$0 sm:$0xff] }
 0x143   :  { %v2419_v4 = vsel %vm2230_vm3, %v2417_v45, 0.0 }
 0x144   :  { %2420 = vadd.xlane.f32.xlu1 %v2419_v4  ;;  %v2826_v4 = vld [vmem:[%s4227_s3 + $0x3] ss:$0 sm:$0xff] }
 0x157   :  { %v2979_v7 = vpop.f32.mrb[12].mxu0 }
 0x158   :  { %v2980_v8 = vpop.f32.mrb[13].mxu0 }
 0x159   :  { %v3001_v9 = vpop.f32.mrb[12].mxu1  ;;  %v2981_v10 = vadd.f32 %v2980_v8, %v2979_v7  ;;  %v2982_v11 = vpop.f32.mrb[14].mxu0  ;;  %v2827_v8 = vld [vmem:[%s4227_s3 + $0x4] ss:$0 sm:$0xff] }
 0x15a   :  { %v3002_v12 = vpop.f32.mrb[13].mxu1  ;;  %v2983_v13 = vpop.f32.mrb[15].mxu0 }
 0x15b   :  { %v2018_v14 = vadd.f32 %v2981_v10, %v1978_v6  ;;  %v3003_v15 = vadd.f32 %v3002_v12, %v3001_v9  ;;  %v3004_v16 = vpop.f32.mrb[14].mxu1 }
 0x15c   :  { %v3005_v20 = vpop.f32.mrb[15].mxu1 }
 0x15d   :  { %v2058_v24 = vadd.f32 %v3003_v15, %v2018_v14  ;;  %v2258_v20 = vld [vmem:[%s4228_s4 + $0x18] sm:$0xff] }
 0x15e   :  { %v3162_v22 = vpack.c.bf16 %v2258_v20, %v2257_v19 }
 0x177   :  { %v3023_v34 = vpop.f32.mrb[16].mxu0 }
 0x178   :  { %v3024_v47 = vpop.f32.mrb[17].mxu0 }
 0x179   :  { %v3045_v35 = vpop.f32.mrb[16].mxu1  ;;  %v3025_v36 = vadd.f32 %v3024_v47, %v3023_v34  ;;  %v3026_v37 = vpop.f32.mrb[18].mxu0 }
 0x17a   :  { %v3046_v38 = vpop.f32.mrb[17].mxu1  ;;  %v3027_v39 = vpop.f32.mrb[19].mxu0 }
 0x17b   :  { %v2098_v40 = vadd.f32 %v3025_v36, %v2058_v24  ;;  %v3047_v41 = vadd.f32 %v3046_v38, %v3045_v35  ;;  %v3048_v42 = vpop.f32.mrb[18].mxu1  ;;  %v2260_v24 = vld [vmem:[%s4228_s4 + $0x28] sm:$0xff]  ;;  %v2823_v38 = vld [vmem:[%s4227_s3 + $0x1] ss:$0 sm:$0xff]  ;;  %v2824_v39 = vld [vmem:[%s4227_s3 + $0x2] ss:$0 sm:$0xff] }
 0x17c   :  { %v3049_v43 = vpop.f32.mrb[19].mxu1  ;;  %v3165_v26 = vpack.c.bf16 %v2260_v24, %v2259_v23 }
 0x17d   :  { %v2138_v44 = vadd.f32 %v3047_v41, %v2098_v40 }
 0x197   :  { %v3067_v46 = vpop.f32.mrb[20].mxu0 }
 0x198   :  { %v3068_v48 = vpop.f32.mrb[21].mxu0 }
 0x199   :  { %v3089_v49 = vpop.f32.mrb[20].mxu1  ;;  %v3069_v50 = vadd.f32 %v3068_v48, %v3067_v46  ;;  %v3070_v51 = vpop.f32.mrb[22].mxu0 }
 0x19a   :  { %v3090_v52 = vpop.f32.mrb[21].mxu1  ;;  %v3071_v53 = vpop.f32.mrb[23].mxu0 }
 0x19b   :  { %v2178_v56 = vadd.f32 %v3069_v50, %v2138_v44  ;;  %v3091_v57 = vadd.f32 %v3090_v52, %v3089_v49  ;;  %v3092_v58 = vpop.f32.mrb[22].mxu1 }
 0x19c   :  { %v3093_v59 = vpop.f32.mrb[23].mxu1 }
 0x19d   :  { %v2218_v61 = vadd.f32 %v3091_v57, %v2178_v56 }
 0x19f   :  { %v2227_v62 = vadd.f32 %v2822_v60, %v2218_v61 }
 0x1a1   :  { %v2231_v63 = vsel %vm2230_vm3, %v2227_v62, 0.0 }
 0x1a2   :  { %2232 = vadd.xlane.f32.xlu0 %v2231_v63 }
 0x1d1   :  { %v2421_v0 = vpop.xlane.xlu1 %2420 }
 0x1d2   :  { %v2422_v1 = vmul.f32 0.015625, %v2421_v0 }
 0x1d4   :  { %v2423_v45 = vadd.f32 1e-05, %v2422_v1 }
 0x1d6   :  { %3386 = vrsqrt.f32 %v2423_v45 }
 0x1e0   :  { %v3387_v2 = vpop.eup %3386 }
 0x1e1   :  { %v2426_v3 = vrot.slane %v3387_v2, 1  ;;  %v2429_v33 = vmul.f32 %v3387_v2, %v4111_v54 }
 0x1e3   :  { %v2430_v5 = vmul.f32 %v2426_v3, %v4114_v55  ;;  %v2435_v6 = vmul.f32 %v2826_v4, %v2429_v33  ;;  %v2255_v55 = vld [vmem:[%s4228_s4] sm:$0xff] }
 0x1e4   :  { %v3159_v18 = vpack.c.bf16 %v2256_v17, %v2255_v55 }
 0x1e5   :  { %v2436_v7 = vmul.f32 %v2826_v4, %v2430_v5  ;;  %v2441_v10 = vadd.f32 %v2827_v8, %v2435_v6 }
 0x1e6   :  { %3160 = vmatpush3.bf16.msra.mxu0 %v3159_v18 }
 0x1e7   :  { %v2442_v9 = vadd.f32 %v2827_v8, %v2436_v7  ;;  %3161 = vmatprep.subr.bf16.mxu0 %v3419_v21 }
 0x1e9   :  { %v2453_v11 = vrot.slane %v2442_v9, 7 }
 0x1ea   :  { %3163 = vmatpush3.bf16.msra.mxu0 %v3162_v22 }
 0x1eb   :  { %v2454_v12 = vsel %vm2399_vm2, %v2453_v11, %v2441_v10  ;;  %3164 = vmatprep.subr.bf16.mxu0 %v3419_v21 }
 0x1ec   :  { %3151 = vmatmul.mubr.msk.f32.vlgmr.msra.gmra.mrb[24].mxu1 %vm2263_vm1, %v2454_v12 }
 0x1ee   :  { %3166 = vmatpush3.bf16.msra.mxu0 %v3165_v26 }
 0x1ef   :  { %3167 = vmatprep.subr.bf16.mxu0 %v3419_v21 }
 0x1f2   :  { %3169 = vmatpush3.bf16.msra.mxu0 %v3168_v29 }
 0x1f3   :  { %3153 = vmatprep.subr.mxu0 %v3421_v25 }
 0x22f   :  { %v2233_v54 = vpop.xlane.xlu0 %2232 }
 0x230   :  { %v2235_v13 = vmul.f32 0.015625, %v2233_v54 }
 0x232   :  { %v2236_v14 = vsub.f32 %v2227_v62, %v2235_v13 }
 0x234   :  { %v2237_v15 = vmul.f32 %v2236_v14, %v2236_v14 }
 0x236   :  { %v2238_v16 = vsel %vm2230_vm3, %v2237_v15, 0.0 }
 0x237   :  { %2239 = vadd.xlane.f32.xlu1 %v2238_v16 }
 0x2bf   :  { %v2523_v30 = vpop.f32.mrb[24].mxu1 }
 0x2c0   :  { %v2527_v31 = vmul.f32 %v2523_v30, %v2523_v30  ;;  %v3152_v32 = vpop.f32.mrb[25].mxu1 }
 0x2c2   :  { %v2528_v34 = vsel %vm2338_vm5, %v2527_v31, 0.0 }
 0x2c3   :  { %2529 = vadd.xlane.f32.xlu1 %v2528_v34 }
 0x2c4   :  { %v2240_v47 = vpop.xlane.xlu1 %2239 }
 0x2c5   :  { %v2241_v35 = vmul.f32 0.015625, %v2240_v47 }
 0x2c7   :  { %v2242_v36 = vadd.f32 1e-05, %v2241_v35 }
 0x2c9   :  { %3388 = vrsqrt.f32 %v2242_v36 }
 0x2d3   :  { %v3389_v37 = vpop.eup %3388 }
 0x2d4   :  { %v2244_v21 = vmul.f32 %v3389_v37, %v2236_v14 }
 0x2d6   :  { %v2249_v40 = vmul.f32 %v2823_v38, %v2244_v21 }
 0x2d8   :  { %v2254_v41 = vadd.f32 %v2824_v39, %v2249_v40 }
 0x2da   :  { %3132 = vmatmul.mubr.msk.f32.vlgmr.msra.gmra.mrb[24].mxu0 %vm2263_vm1, %v2254_v41 }
 0x2db   :  { %3155 = vmatprep.mubr.msk.f32.mxu0 %vm3420_vm4, %v3421_v25  ;;  %v2612_v25 = vstv %s4224_s0 }
 0x350   :  { %v2530_v42 = vpop.xlane.xlu1 %2529 }
 0x351   :  { %v2531_v43 = vadd.f32 1e-12, %v2530_v42 }
 0x353   :  { %3390 = vrsqrt.f32 %v2531_v43 }
 0x35d   :  { %v3391_v44 = vpop.eup %3390 }
 0x35e   :  { %v2533_v46 = vmul.f32 %v3391_v44, %v2523_v30 }
 0x360   :  { %3154 = vmatpush3.xpose.msk.msra.mxu0 %vm2535_vm6, %v2533_v46 }
 0x3ad   :  { %v2333_v48 = vpop.f32.mrb[24].mxu0 }
 0x3ae   :  { %v2337_v49 = vmul.f32 %v2333_v48, %v2333_v48  ;;  %v3133_v50 = vpop.f32.mrb[25].mxu0 }
 0x3b0   :  { %v2339_v51 = vsel %vm2338_vm5, %v2337_v49, 0.0 }
 0x3b1   :  { %2340 = vadd.xlane.f32.xlu1 %v2339_v51 }
 0x43e   :  { %v2341_v52 = vpop.xlane.xlu1 %2340 }
 0x43f   :  { %v2342_v53 = vadd.f32 1e-12, %v2341_v52 }
 0x441   :  { %3392 = vrsqrt.f32 %v2342_v53 }
 0x44b   :  { %v3393_v56 = vpop.eup %3392 }
 0x44c   :  { %v2344_v57 = vmul.f32 %v3393_v56, %v2333_v48 }
 0x44e   :  { %3156 = vmatmul.mubr.msk.f32.vlgmr.msra.gmra.mrb[26].mxu0 %vm2535_vm6, %v2344_v57 }
 0x521   :  { %v2608_v58 = vpop.f32.mrb[26].mxu0 }
 0x522   :  { %v2613_v59 = vmul.f32 %v2612_v25, %v2608_v58  ;;  %v3157_v60 = vpop.f32.mrb[27].mxu0 }
 0x524   :  { %2615 = vst.msk [vmem:[#allocation3] sm:$0x3] %vm2614_vm7, %v2613_v59 }
 0x525   :  { %3405 = shalt.err (!%p3402_p4)
}
 0x526   :  { %s3406_s24 = scalar_lea.hbm %s4231_s7, 32 }
 0x527   :  { %p3407_p5 = scmp.ne.s32.totalorder %s4231_s7, %s3406_s24  ;;  %p3410_p6 = scmp.lt.u32.totalorder %s3406_s24, %s4231_s7 }
 0x529   :  { %p3412_p7 = pnand %p3410_p6, %p3407_p5 }
 0x52b   :  { %3415 = shalt.err (!%p3412_p7)
}
 0x52c   :  { %2625 = dma.vmem_to_hbm [thread:$0]  %s2623_s20, 32, %s4231_s7, [#allocation4]  }
 0x52d   :  { %3416 = dma.done.wait [#allocation4], 32  }
 0x52e   :  { %3417 = vsyncadd [#allocation4], 4294967264 }
 0x52f   :  { %2629 = vsyncpa [#allocation4], 1 }

</bundles_post_ra>
